<compile_context>
chip_gen: v5e
topology: v5e:2x2
jax: 0.10.0
libtpu: 0.0.40
codegen_flags: <defaults>
</compile_context>

<pallas_src>
import numpy as np

import jax
import jax.numpy as jnp
from jax.experimental import pallas as pl
from jax.experimental.pallas import tpu as pltpu

# ---------------- configuration (small, TPU-tile friendly shapes) -----------
B = 2                    # batch
IN_CH = 3                # RGB input
IMG = 16                 # input spatial size
C_FEAT = 128             # stand-in for EfficientNet-b3's 1536 feature channels
C_HID = C_FEAT // 2      # last_linear hidden width (in_features // 2)
HF = WF = IMG // 2       # feature-map spatial size (stem conv has stride 2)
HW = HF * WF             # flattened spatial positions (64)
K_RAW = 9 * IN_CH        # stem im2col contraction dim (27)
K_PAD = 32               # padded to a multiple of 8 for clean vector loads
BN_EPS = 1e-5
NEG_BIG = -1e30
# TODO(synk): Config.BBOX_MIN_SIZE is not provided in the source; fixed here.
BBOX_MIN_SIZE = 0.01


# ================================ kernel =====================================
def _fused_forward_kernel(cols_ref, wstem_ref, shift_ref, matt_ref,
                          w1_ref, b1_ref, w2_ref, hc_ref, out_ref):
    """Per-batch fused forward: stem conv -> spatial attention -> attention-
    weighted global average pool -> head MLP -> sigmoid/scale/offset -> clamp.
    All intermediates stay in VMEM/vregs."""
    # ---- extract_features stand-in: im2col matmul (folded BN2d) + swish -----
    feat = jnp.dot(cols_ref[...], wstem_ref[...],          # bf16 x bf16 -> f32
                   preferred_element_type=jnp.float32)      # (HW, C_FEAT)
    feat = feat + shift_ref[...]
    feat = feat * jax.nn.sigmoid(feat)                      # swish

    # ---- SpatialAttention: channel mean/max -> 7x7 conv (Toeplitz) -> sigmoid
    avg = jnp.mean(feat, axis=1, keepdims=True)             # (HW, 1)
    mx = jnp.max(feat, axis=1, keepdims=True)               # (HW, 1)
    logits = (jnp.dot(matt_ref[:, 0:HW], avg, preferred_element_type=jnp.float32)
              + jnp.dot(matt_ref[:, HW:2 * HW], mx,
                        preferred_element_type=jnp.float32))  # (HW, 1)
    attn = jax.nn.sigmoid(logits)                           # (HW, 1)

    # ---- features * attention, global average pool over spatial positions ---
    pooled = jnp.sum(feat * attn, axis=0, keepdims=True) * (1.0 / HW)  # (1,C_FEAT)

    # ---- head: Linear -> ReLU -> BatchNorm1d(folded into w2/b2) -> Linear ----
    # Dropout(0.3) is identity at inference.
    # TODO(synk): BatchNorm1d uses running stats (eval semantics); train-mode
    # batch statistics are not implemented.
    h = jnp.dot(pooled.astype(jnp.bfloat16), w1_ref[...],
                preferred_element_type=jnp.float32) + b1_ref[...]      # (1, C_HID)
    h = jnp.maximum(h, 0.0)
    y = jnp.dot(h, w2_ref[...], preferred_element_type=jnp.float32) \
        + hc_ref[0:1, :]                                               # (1, 4)
    p = jax.nn.sigmoid(y) * hc_ref[1:2, :] + hc_ref[2:3, :]            # (1, 4)

    # ---- bbox clamp: x2 >= x1+min, y2 >= y1+min ------------------------------
    # bound = p @ S + [-inf,-inf,min,min]  with S mapping (x1,y1)->(cols 2,3);
    # a single unmasked full-width store of the result.
    bound = jnp.dot(p, hc_ref[4:8, :],
                    preferred_element_type=jnp.float32) + hc_ref[3:4, :]
    out_ref[...] = jnp.maximum(p, bound)


# ================================ host-side glue =============================
def _conv7x7_toeplitz(w_att):
    """Exact dense operator for Conv2d(2->1, k=7, pad=3, bias=False) on the
    HFxWF map: logits_flat = M @ concat([avg_flat, max_flat])."""
    m = np.zeros((HW, 2 * HW), np.float32)
    w = np.asarray(w_att)
    for oy in range(HF):
        for ox in range(WF):
            j = oy * WF + ox
            for ky in range(7):
                iy = oy + ky - 3
                if not 0 <= iy < HF:
                    continue
                for kx in range(7):
                    ix = ox + kx - 3
                    if not 0 <= ix < WF:
                        continue
                    i = iy * WF + ix
                    m[j, i] = w[0, ky, kx]          # channel 0 -> avg map
                    m[j, HW + i] = w[1, ky, kx]     # channel 1 -> max map
    return jnp.asarray(m)


def _im2col_stem(x_nhwc):
    """3x3/stride-2 patches of zero-padded NHWC input -> (B, HW, K_PAD) bf16."""
    xp = jnp.pad(x_nhwc, ((0, 0), (1, 1), (1, 1), (0, 0)))
    patches = []
    for ky in range(3):
        for kx in range(3):
            patches.append(xp[:, ky:ky + 2 * HF:2, kx:kx + 2 * WF:2, :])
    p = jnp.stack(patches, axis=3)                       # (B, HF, WF, 9, IN_CH)
    cols = p.reshape(B, HW, K_RAW)
    cols = jnp.pad(cols, ((0, 0), (0, 0), (0, K_PAD - K_RAW)))
    return cols.astype(jnp.bfloat16)


def init_params(key):
    ks = jax.random.split(key, 10)
    # --- stand-in stem conv (3x3, stride 2) with folded BatchNorm2d (eval) ---
    # TODO(synk): when loading real PyTorch OIHW conv weights, the
    # (kh*kw*C_in, C_out) flattening order must match _im2col_stem.
    w_stem = jax.random.normal(ks[0], (K_RAW, C_FEAT), jnp.float32) * 0.1
    gamma = 1.0 + 0.1 * jax.random.normal(ks[1], (C_FEAT,), jnp.float32)
    beta = 0.1 * jax.random.normal(ks[2], (C_FEAT,), jnp.float32)
    mean = 0.1 * jax.random.normal(ks[3], (C_FEAT,), jnp.float32)
    var = 1.0 + 0.1 * jnp.abs(jax.random.normal(ks[4], (C_FEAT,), jnp.float32))
    scale = gamma / jnp.sqrt(var + BN_EPS)
    w_stem_eff = jnp.pad(w_stem * scale[None, :], ((0, K_PAD - K_RAW), (0, 0)))
    stem_shift = (beta - mean * scale)[None, :]                   # (1, C_FEAT)

    # --- SpatialAttention: Conv2d(2, 1, kernel=7, padding=3, bias=False) -----
    w_att = jax.random.normal(ks[5], (2, 7, 7), jnp.float32) * 0.1
    m_att = _conv7x7_toeplitz(w_att)                              # (HW, 2*HW)

    # --- last_linear head: Linear -> ReLU -> BN1d -> Dropout -> Linear -------
    w1 = jax.random.normal(ks[6], (C_FEAT, C_HID), jnp.float32) / np.sqrt(C_FEAT)
    b1 = 0.01 * jax.random.normal(ks[7], (1, C_HID), jnp.float32)
    g1 = jnp.ones((C_HID,), jnp.float32)        # BatchNorm1d weight
    beta1 = jnp.zeros((C_HID,), jnp.float32)    # BatchNorm1d bias
    mu1 = jnp.zeros((C_HID,), jnp.float32)      # running_mean
    var1 = jnp.ones((C_HID,), jnp.float32)      # running_var
    w2 = jax.random.normal(ks[8], (C_HID, 4), jnp.float32) / np.sqrt(C_HID)
    b2 = 0.01 * jax.random.normal(ks[9], (1, 4), jnp.float32)
    # fold BN1d (eval, running stats) into the second linear
    s = g1 / jnp.sqrt(var1 + BN_EPS)
    t = beta1 - mu1 * s
    w2_eff = w2 * s[:, None]
    b2_eff = b2 + t[None, :] @ w2

    scale_factors = jnp.array([[0.4, 0.4, 0.6, 0.6]], jnp.float32)
    offsets = jnp.array([[0.1, 0.1, 0.5, 0.5]], jnp.float32)
    bvec = jnp.array([[NEG_BIG, NEG_BIG, BBOX_MIN_SIZE, BBOX_MIN_SIZE]], jnp.float32)
    smat = jnp.zeros((4, 4), jnp.float32).at[0, 2].set(1.0).at[1, 3].set(1.0)
    # packed head constants: rows = [b2_eff, scale, offset, bound_shift, S(4x4)]
    head_consts = jnp.concatenate([b2_eff, scale_factors, offsets, bvec, smat],
                                  axis=0)                          # (8, 4)

    return dict(w_stem_eff=w_stem_eff.astype(jnp.bfloat16),
                stem_shift=stem_shift,
                m_att=m_att,
                w1=w1.astype(jnp.bfloat16),
                b1=b1,
                w2_eff=w2_eff,
                head_consts=head_consts)


@jax.jit
def improved_efficient_net_forward(x_nchw, params):
    # NCHW -> NHWC (channels on the lane axis), then im2col for the stem conv.
    x = jnp.transpose(x_nchw, (0, 2, 3, 1)).astype(jnp.float32)
    cols = _im2col_stem(x)                                         # (B, HW, K_PAD)

    out = pl.pallas_call(
        _fused_forward_kernel,
        out_shape=jax.ShapeDtypeStruct((B, 1, 4), jnp.float32),
        grid=(B,),
        in_specs=[
            pl.BlockSpec((None, HW, K_PAD), lambda b: (b, 0, 0)),   # per-batch cols
            pl.BlockSpec((K_PAD, C_FEAT), lambda b: (0, 0)),        # w_stem_eff (bf16)
            pl.BlockSpec((1, C_FEAT), lambda b: (0, 0)),            # stem_shift
            pl.BlockSpec((HW, 2 * HW), lambda b: (0, 0)),           # attention operator
            pl.BlockSpec((C_FEAT, C_HID), lambda b: (0, 0)),        # w1 (bf16)
            pl.BlockSpec((1, C_HID), lambda b: (0, 0)),             # b1
            pl.BlockSpec((C_HID, 4), lambda b: (0, 0)),             # w2_eff (BN folded)
            pl.BlockSpec((8, 4), lambda b: (0, 0)),                 # packed head consts
        ],
        out_specs=pl.BlockSpec((None, 1, 4), lambda b: (b, 0, 0)),
        compiler_params=pltpu.CompilerParams(
            dimension_semantics=("parallel",)),                     # 2 TCs on v7x
    )(cols, params["w_stem_eff"], params["stem_shift"], params["m_att"],
      params["w1"], params["b1"], params["w2_eff"], params["head_consts"])
    return out.reshape(B, 4)


if __name__ == "__main__":
    key = jax.random.PRNGKey(0)
    k_in, k_par = jax.random.split(key)
    x = jax.random.normal(k_in, (B, IN_CH, IMG, IMG), jnp.float32)   # NCHW input
    params = init_params(k_par)

    pred = improved_efficient_net_forward(x, params)
    jax.block_until_ready(pred)

    assert pred.shape == (B, 4)
    assert bool(jnp.all(jnp.isfinite(pred)))
    # bbox invariant: x2 >= x1 + min, y2 >= y1 + min
    assert bool(jnp.all(pred[:, 2] >= pred[:, 0] + BBOX_MIN_SIZE - 1e-6))
    assert bool(jnp.all(pred[:, 3] >= pred[:, 1] + BBOX_MIN_SIZE - 1e-6))
    print("KERNEL_OK")
</pallas_src>

<mosaic_0001>
module attributes {stable_mosaic.version = 11 : i64} {
  func.func @_fused_forward_kernel(%arg0: i32, %arg1: memref<1x64x32xbf16, #tpu.memory_space<vmem>>, %arg2: memref<32x128xbf16, #tpu.memory_space<vmem>>, %arg3: memref<1x128xf32, #tpu.memory_space<vmem>>, %arg4: memref<64x128xf32, #tpu.memory_space<vmem>>, %arg5: memref<128x64xbf16, #tpu.memory_space<vmem>>, %arg6: memref<1x64xf32, #tpu.memory_space<vmem>>, %arg7: memref<64x4xf32, #tpu.memory_space<vmem>>, %arg8: memref<8x4xf32, #tpu.memory_space<vmem>>, %arg9: memref<1x1x4xf32, #tpu.memory_space<vmem>>) attributes {dimension_semantics = [#tpu.dimension_semantics<parallel>], iteration_bounds = array<i64: 2>, scalar_prefetch = 0 : i64, scratch_operands = 0 : i64, tpu.core_type = #tpu.core_type<tc>, window_params = [{transform_indices = @transform_0, window_bounds = array<i64: 1, 64, 32>}, {pipeline_mode = #tpu.pipeline_mode<synchronous>, transform_indices = @transform_1, window_bounds = array<i64: 32, 128>}, {pipeline_mode = #tpu.pipeline_mode<synchronous>, transform_indices = @transform_2, window_bounds = array<i64: 1, 128>}, {pipeline_mode = #tpu.pipeline_mode<synchronous>, transform_indices = @transform_3, window_bounds = array<i64: 64, 128>}, {pipeline_mode = #tpu.pipeline_mode<synchronous>, transform_indices = @transform_4, window_bounds = array<i64: 128, 64>}, {pipeline_mode = #tpu.pipeline_mode<synchronous>, transform_indices = @transform_5, window_bounds = array<i64: 1, 64>}, {pipeline_mode = #tpu.pipeline_mode<synchronous>, transform_indices = @transform_6, window_bounds = array<i64: 64, 4>}, {pipeline_mode = #tpu.pipeline_mode<synchronous>, transform_indices = @transform_7, window_bounds = array<i64: 8, 4>}, {transform_indices = @transform_8, window_bounds = array<i64: 1, 1, 4>}]} {
    %c0 = arith.constant 0 : index
    %c0_0 = arith.constant 0 : index
    %c0_1 = arith.constant 0 : index
    %0 = vector.load %arg1[%c0, %c0_0, %c0_1] : memref<1x64x32xbf16, #tpu.memory_space<vmem>>, vector<1x64x32xbf16>
    %1 = vector.shape_cast %0 : vector<1x64x32xbf16> to vector<64x32xbf16>
    %c0_2 = arith.constant 0 : index
    %c0_3 = arith.constant 0 : index
    %2 = vector.load %arg2[%c0_2, %c0_3] : memref<32x128xbf16, #tpu.memory_space<vmem>>, vector<32x128xbf16>
    %cst = arith.constant dense<0.000000e+00> : vector<64x128xf32>
    %3 = tpu.matmul %1, %2, %cst {dimension_numbers = #tpu.dot_dimension_numbers<[1], [0], [0], [1], [0, 0, 1, 1], [], []>} : vector<64x32xbf16>, vector<32x128xbf16>, vector<64x128xf32> -> vector<64x128xf32>
    %c0_4 = arith.constant 0 : index
    %c0_5 = arith.constant 0 : index
    %4 = vector.load %arg3[%c0_4, %c0_5] : memref<1x128xf32, #tpu.memory_space<vmem>>, vector<1x128xf32>
    %5 = vector.broadcast %4 : vector<1x128xf32> to vector<64x128xf32>
    %6 = arith.addf %3, %5 : vector<64x128xf32>
    %7 = arith.negf %6 : vector<64x128xf32>
    %8 = math.exp %7 : vector<64x128xf32>
    %cst_6 = arith.constant 1.000000e+00 : f32
    %9 = vector.broadcast %cst_6 : f32 to vector<64x128xf32>
    %10 = arith.addf %9, %8 : vector<64x128xf32>
    %11 = arith.divf %9, %10 : vector<64x128xf32>
    %12 = arith.mulf %6, %11 : vector<64x128xf32>
    %cst_7 = arith.constant dense<0.000000e+00> : vector<64xf32>
    %13 = vector.multi_reduction <add>, %12, %cst_7 [1] : vector<64x128xf32> to vector<64xf32>
    %14 = vector.shape_cast %13 : vector<64xf32> to vector<64x1xf32>
    %cst_8 = arith.constant 1.280000e+02 : f32
    %15 = vector.broadcast %cst_8 : f32 to vector<64x1xf32>
    %16 = arith.divf %14, %15 : vector<64x1xf32>
    %cst_9 = arith.constant dense<0xFF800000> : vector<64xf32>
    %17 = vector.multi_reduction <maximumf>, %12, %cst_9 [1] : vector<64x128xf32> to vector<64xf32>
    %18 = vector.shape_cast %17 : vector<64xf32> to vector<64x1xf32>
    %c0_10 = arith.constant 0 : index
    %c0_11 = arith.constant 0 : index
    %19 = vector.load %arg4[%c0_10, %c0_11] : memref<64x128xf32, #tpu.memory_space<vmem>>, vector<64x64xf32>
    %cst_12 = arith.constant dense<0.000000e+00> : vector<64x1xf32>
    %20 = tpu.matmul %19, %16, %cst_12 {dimension_numbers = #tpu.dot_dimension_numbers<[1], [0], [0], [1], [0, 0, 1, 1], [], []>} : vector<64x64xf32>, vector<64x1xf32>, vector<64x1xf32> -> vector<64x1xf32>
    %c0_13 = arith.constant 0 : index
    %c64 = arith.constant 64 : index
    %21 = vector.load %arg4[%c0_13, %c64] : memref<64x128xf32, #tpu.memory_space<vmem>>, vector<64x64xf32>
    %cst_14 = arith.constant dense<0.000000e+00> : vector<64x1xf32>
    %22 = tpu.matmul %21, %18, %cst_14 {dimension_numbers = #tpu.dot_dimension_numbers<[1], [0], [0], [1], [0, 0, 1, 1], [], []>} : vector<64x64xf32>, vector<64x1xf32>, vector<64x1xf32> -> vector<64x1xf32>
    %23 = arith.addf %20, %22 : vector<64x1xf32>
    %24 = arith.negf %23 : vector<64x1xf32>
    %25 = math.exp %24 : vector<64x1xf32>
    %cst_15 = arith.constant 1.000000e+00 : f32
    %26 = vector.broadcast %cst_15 : f32 to vector<64x1xf32>
    %27 = arith.addf %26, %25 : vector<64x1xf32>
    %28 = arith.divf %26, %27 : vector<64x1xf32>
    %29 = vector.broadcast %28 : vector<64x1xf32> to vector<64x128xf32>
    %30 = arith.mulf %12, %29 : vector<64x128xf32>
    %cst_16 = arith.constant dense<0.000000e+00> : vector<128xf32>
    %31 = vector.multi_reduction <add>, %30, %cst_16 [0] : vector<64x128xf32> to vector<128xf32>
    %32 = vector.shape_cast %31 : vector<128xf32> to vector<1x128xf32>
    %cst_17 = arith.constant 1.562500e-02 : f32
    %33 = vector.broadcast %cst_17 : f32 to vector<1x128xf32>
    %34 = arith.mulf %32, %33 : vector<1x128xf32>
    %35 = arith.truncf %34 : vector<1x128xf32> to vector<1x128xbf16>
    %c0_18 = arith.constant 0 : index
    %c0_19 = arith.constant 0 : index
    %36 = vector.load %arg5[%c0_18, %c0_19] : memref<128x64xbf16, #tpu.memory_space<vmem>>, vector<128x64xbf16>
    %cst_20 = arith.constant dense<0.000000e+00> : vector<1x64xf32>
    %37 = tpu.matmul %35, %36, %cst_20 {dimension_numbers = #tpu.dot_dimension_numbers<[1], [0], [0], [1], [0, 0, 1, 1], [], []>} : vector<1x128xbf16>, vector<128x64xbf16>, vector<1x64xf32> -> vector<1x64xf32>
    %c0_21 = arith.constant 0 : index
    %c0_22 = arith.constant 0 : index
    %38 = vector.load %arg6[%c0_21, %c0_22] : memref<1x64xf32, #tpu.memory_space<vmem>>, vector<1x64xf32>
    %39 = arith.addf %37, %38 : vector<1x64xf32>
    %cst_23 = arith.constant 0.000000e+00 : f32
    %40 = vector.broadcast %cst_23 : f32 to vector<1x64xf32>
    %41 = arith.maximumf %39, %40 : vector<1x64xf32>
    %c0_24 = arith.constant 0 : index
    %c0_25 = arith.constant 0 : index
    %42 = vector.load %arg7[%c0_24, %c0_25] : memref<64x4xf32, #tpu.memory_space<vmem>>, vector<64x4xf32>
    %cst_26 = arith.constant dense<0.000000e+00> : vector<1x4xf32>
    %43 = tpu.matmul %41, %42, %cst_26 {dimension_numbers = #tpu.dot_dimension_numbers<[1], [0], [0], [1], [0, 0, 1, 1], [], []>} : vector<1x64xf32>, vector<64x4xf32>, vector<1x4xf32> -> vector<1x4xf32>
    %c0_27 = arith.constant 0 : index
    %c0_28 = arith.constant 0 : index
    %44 = vector.load %arg8[%c0_27, %c0_28] : memref<8x4xf32, #tpu.memory_space<vmem>>, vector<1x4xf32>
    %45 = arith.addf %43, %44 : vector<1x4xf32>
    %46 = arith.negf %45 : vector<1x4xf32>
    %47 = math.exp %46 : vector<1x4xf32>
    %cst_29 = arith.constant 1.000000e+00 : f32
    %48 = vector.broadcast %cst_29 : f32 to vector<1x4xf32>
    %49 = arith.addf %48, %47 : vector<1x4xf32>
    %50 = arith.divf %48, %49 : vector<1x4xf32>
    %c1 = arith.constant 1 : index
    %c0_30 = arith.constant 0 : index
    %51 = vector.load %arg8[%c1, %c0_30] : memref<8x4xf32, #tpu.memory_space<vmem>>, vector<1x4xf32>
    %52 = arith.mulf %50, %51 : vector<1x4xf32>
    %c2 = arith.constant 2 : index
    %c0_31 = arith.constant 0 : index
    %53 = vector.load %arg8[%c2, %c0_31] : memref<8x4xf32, #tpu.memory_space<vmem>>, vector<1x4xf32>
    %54 = arith.addf %52, %53 : vector<1x4xf32>
    %c4 = arith.constant 4 : index
    %c0_32 = arith.constant 0 : index
    %55 = vector.load %arg8[%c4, %c0_32] : memref<8x4xf32, #tpu.memory_space<vmem>>, vector<4x4xf32>
    %cst_33 = arith.constant dense<0.000000e+00> : vector<1x4xf32>
    %56 = tpu.matmul %54, %55, %cst_33 {dimension_numbers = #tpu.dot_dimension_numbers<[1], [0], [0], [1], [0, 0, 1, 1], [], []>} : vector<1x4xf32>, vector<4x4xf32>, vector<1x4xf32> -> vector<1x4xf32>
    %c3 = arith.constant 3 : index
    %c0_34 = arith.constant 0 : index
    %57 = vector.load %arg8[%c3, %c0_34] : memref<8x4xf32, #tpu.memory_space<vmem>>, vector<1x4xf32>
    %58 = arith.addf %56, %57 : vector<1x4xf32>
    %59 = arith.maximumf %54, %58 : vector<1x4xf32>
    %c0_35 = arith.constant 0 : index
    %c0_36 = arith.constant 0 : index
    %c0_37 = arith.constant 0 : index
    %60 = vector.load %arg9[%c0_35, %c0_36, %c0_37] : memref<1x1x4xf32, #tpu.memory_space<vmem>>, vector<1x1x4xf32>
    %61 = vector.shape_cast %60 : vector<1x1x4xf32> to vector<1x4xf32>
    %62 = vector.shape_cast %59 : vector<1x4xf32> to vector<1x1x4xf32>
    tpu.vector_store %arg9[%c0_35, %c0_36, %c0_37], %62 {strides = array<i32>} : memref<1x1x4xf32, #tpu.memory_space<vmem>>, vector<1x1x4xf32>,
    return
  }
  func.func @transform_0(%arg0: i32) -> (i32, i32, i32) {
    %c0_i32 = arith.constant 0 : i32
    %c0_i32_0 = arith.constant 0 : i32
    %c0_i32_1 = arith.constant 0 : i32
    return %arg0, %c0_i32, %c0_i32_0 : i32, i32, i32
  }
  func.func @transform_1(%arg0: i32) -> (i32, i32) {
    %c0_i32 = arith.constant 0 : i32
    %c0_i32_0 = arith.constant 0 : i32
    %c0_i32_1 = arith.constant 0 : i32
    return %c0_i32, %c0_i32_0 : i32, i32
  }
  func.func @transform_2(%arg0: i32) -> (i32, i32) {
    %c0_i32 = arith.constant 0 : i32
    %c0_i32_0 = arith.constant 0 : i32
    %c0_i32_1 = arith.constant 0 : i32
    return %c0_i32, %c0_i32_0 : i32, i32
  }
  func.func @transform_3(%arg0: i32) -> (i32, i32) {
    %c0_i32 = arith.constant 0 : i32
    %c0_i32_0 = arith.constant 0 : i32
    %c0_i32_1 = arith.constant 0 : i32
    return %c0_i32, %c0_i32_0 : i32, i32
  }
  func.func @transform_4(%arg0: i32) -> (i32, i32) {
    %c0_i32 = arith.constant 0 : i32
    %c0_i32_0 = arith.constant 0 : i32
    %c0_i32_1 = arith.constant 0 : i32
    return %c0_i32, %c0_i32_0 : i32, i32
  }
  func.func @transform_5(%arg0: i32) -> (i32, i32) {
    %c0_i32 = arith.constant 0 : i32
    %c0_i32_0 = arith.constant 0 : i32
    %c0_i32_1 = arith.constant 0 : i32
    return %c0_i32, %c0_i32_0 : i32, i32
  }
  func.func @transform_6(%arg0: i32) -> (i32, i32) {
    %c0_i32 = arith.constant 0 : i32
    %c0_i32_0 = arith.constant 0 : i32
    %c0_i32_1 = arith.constant 0 : i32
    return %c0_i32, %c0_i32_0 : i32, i32
  }
  func.func @transform_7(%arg0: i32) -> (i32, i32) {
    %c0_i32 = arith.constant 0 : i32
    %c0_i32_0 = arith.constant 0 : i32
    %c0_i32_1 = arith.constant 0 : i32
    return %c0_i32, %c0_i32_0 : i32, i32
  }
  func.func @transform_8(%arg0: i32) -> (i32, i32, i32) {
    %c0_i32 = arith.constant 0 : i32
    %c0_i32_0 = arith.constant 0 : i32
    %c0_i32_1 = arith.constant 0 : i32
    return %arg0, %c0_i32, %c0_i32_0 : i32, i32, i32
  }
}

</mosaic_0001>

<bundles_post_ra>
// kernel: improved_efficient_net_forward.1
= control target key start
LH: loop header
LB: loop body
LE: loop exit
PB: predicated region body
PF: predicated region fallthrough
CT: control target
= control target key end

     0   :  { %13 = vsyncpa [#allocation3], 0  ;;  %s1828_s0 = inlined_call_operand.vmem [shape: bf16[2,64,32], index: 0, kind: input, shape index: {}]   ;;  %s1829_s1 = inlined_call_operand.vmem [shape: bf16[32,128], index: 1, kind: input, shape index: {}]   ;;  %s1830_s2 = inlined_call_operand.vmem [shape: f32[1,128], index: 2, kind: input, shape index: {}]   ;;  %s1831_s3 = inlined_call_operand.vmem [shape: f32[64,128], index: 3, kind: input, shape index: {}]   ;;  %s1832_s4 = inlined_call_operand.vmem [shape: bf16[128,64], index: 4, kind: input, shape index: {}]   ;;  %s1833_s5 = inlined_call_operand.vmem [shape: f32[1,64], index: 5, kind: input, shape index: {}]   ;;  %s1834_s6 = inlined_call_operand.vmem [shape: f32[64,4], index: 6, kind: input, shape index: {}]   ;;  %s1835_s7 = inlined_call_operand.vmem [shape: f32[8,4], index: 7, kind: input, shape index: {}]   ;;  %s1836_s8 = inlined_call_operand.hbm [shape: f32[2,1,4], index: 8, kind: output, shape index: {}]  }
   0x1   :  { %15 = vsyncpa [#allocation3 + $0x1], 0  ;;  %s1545_s27 = smov 0   ;;  %s1547_s28 = smov 0  }
   0x2   :  { %s1549_s29 = smov 0   ;;  %s1551_s30 = smov 0  }
   0x3 LB: > { %s1566_s9 = sadd.s32 4294967295, %s1495_s30   ;;  %s1198_s10 = sadd.s32 4294967294, %s1495_s30   ;;  %s1495_s30 = sphi %s1551_s30, %s1842_s30   ;;  %s1491_s29 = sphi %s1549_s29, %s1841_s29   ;;  %s1487_s28 = sphi %s1547_s28, %s1840_s28   ;;  %s1483_s27 = sphi %s1545_s27, %s1839_s27  }
   0x4   : > { %s1570_s11 = sadd.s32 1, %s1495_s30   ;;  %s201_s12 = sadd.s32 1, %s1491_s29 }
   0x5   : > { %s198_s13 = ssub.s32 %s1495_s30, %s1570_s11  ;;  %p211_p0 = scmp.ne.s32.totalorder %s1491_s29, %s1487_s28 }
   0x6   : > { %p199_p1 = scmp.eq.s32.totalorder %s198_s13, 0  ;;  %p212_p2 = scmp.eq.s32.totalorder %s1566_s9, 1 }
   0x7   : > { %p217_p3 = scmp.ne.s32.totalorder %s1487_s28, %s1483_s27  ;;  %p218_p4 = scmp.eq.s32.totalorder %s1198_s10, 1 }
   0x8   : > { %s1581_s14 = scalar_select %p199_p1, %s1491_s29, %s201_s12  }
   0x9   : > { %p1583_p5 = por %p212_p2, %p211_p0  ;;  %p1587_p6 = por %p218_p4, %p217_p3 }
   0xa   : > { %p1201_p7 = scmp.ge.s32.totalorder %s1495_s30, 1  ;;  %p265_p8 = scmp.lt.s32.totalorder %s1495_s30, 3 }
   0xc   : > { %p266_p9 = pnand %p1201_p7, %p265_p8 }
   0xd   : > { %p298_p10 = scmp.lt.s32.totalorder (!%p266_p9), %s1566_s9, 1  ;;  %s1497_s17 = smov (!%p266_p9), 64  }
   0xe   : > { %269 = sbr.rel (%p266_p9) target bundleno = 1201 (0x4b1), region = 52  ;;  %s1453_s23 = scalar_lea.hbm (!%p266_p9), %s1836_s8, 2 }
  0x13   : > { %v1308_v0 = vld [vmem:[%s1829_s1 + $0x8] sm:$0xff]  ;;  %v1307_v1 = vld [vmem:[%s1829_s1] sm:$0xff]  ;;  %s299_s21 = scalar_select %p298_p10, %s1566_s9, 1  ;;  %vm352_vm0 = vcmask 261120  }
  0x14   : > { %371 = vmatpush.bf16.msra.mxu0 %v1308_v0  ;;  %v1607_v6 = vld [vmem:[%s1830_s2] ss:$0 sm:$0xff] }
  0x15   : > { %s1302_s22 = sshll.u32 %s299_s21, 5 }
  0x16   : > { %s302_s25 = scalar_lea.vmem %s1828_s0, %s1302_s22  ;;  %s296_s22 = sand.u32 1, %s1487_s28  }
  0x17   : > { %v1303_v2 = vld [vmem:[%s302_s25] sm:$0xff]  ;;  %v1304_v3 = vld [vmem:[%s302_s25 + $0x8] sm:$0xff]  ;;  %v1305_v4 = vld [vmem:[%s302_s25 + $0x10] sm:$0xff]  ;;  %s297_s12 = scalar_lea.vmem [#allocation2], %s296_s22  ;;  %s1131_s19 = scalar_lea.sflag [#allocation3], %s296_s22 }
  0x18   : > { %372 = vmatpush.bf16.msra.mxu0 %v1307_v1  ;;  %v1306_v5 = vld [vmem:[%s302_s25 + $0x18] sm:$0xff]  ;;  %s1139_s25 = scalar_lea.hbm %s1836_s8, %s1566_s9  ;;  %s1141_s13 = sshll.u32 %s297_s12, 4  ;;  %s1142_s13 = int_to_ptr.vmem [resolvable:$true] %s1141_s13 }
  0x19   : > { %s1143_s18 = sshll.u32 %s1139_s25, 4  ;;  %s1144_s18 = int_to_ptr.hbm [resolvable:$true] %s1143_s18 }
  0x1b   : > { %1228 = vmatmul.msk.bf16.vlgmr.msra.gmra.mxu0 %vm352_vm0, %v1303_v2 }
  0x2b   : > { %1229 = vmatmul.msk.bf16.gmra.mxu0 %vm352_vm0, %v1304_v3 }
  0x3b   : > { %1230 = vmatmul.msk.bf16.gmra.mxu0 %vm352_vm0, %v1305_v4 }
  0x4b   : > { %1231 = vmatmul.msk.bf16.gmra.mxu0 %vm352_vm0, %v1306_v5 }
  0x98   : > { %v374_v7 = vpop.f32.mrf.mxu0 }
  0x99   : > { %v375_v8 = vadd.f32 %v1607_v6, %v374_v7 }
  0x9b   : > { %v1232_v9 = vmul.f32 -1.442695, %v375_v8 }
  0x9d   : > { %1363 = vpow2.f32 %v1232_v9 }
  0xa0   : > { %v376_v10 = vpop.f32.mrf.mxu0 }
  0xa1   : > { %v377_v11 = vadd.f32 %v1607_v6, %v376_v10 }
  0xa3   : > { %v1364_v12 = vpop.eup %1363  ;;  %v1233_v13 = vmul.f32 -1.442695, %v377_v11 }
  0xa4   : > { %v418_v14 = vadd.f32 1.0, %v1364_v12 }
  0xa5   : > { %1365 = vpow2.f32 %v1233_v13 }
  0xa6   : > { %1367 = vrcp.f32 %v418_v14  ;;  %v437_v23 = vand.u32 2147483648, %v418_v14  ;;  %v435_v26 = vand.u32 2147483647, %v418_v14  ;;  %vm431_vm2 = vweird.f32 %v418_v14 }
  0xa8   : > { %v379_v15 = vpop.f32.mrf.mxu0  ;;  %v438_v32 = vor.u32 1.1754944e-38, %v437_v23  ;;  %vm436_vm4 = vcmp.eq.f32.partialorder %v435_v26, 8.507059e+37 }
  0xa9   : > { %v1612_v16 = vadd.f32 %v1607_v6, %v379_v15 }
  0xab   : > { %v1366_v17 = vpop.eup %1365  ;;  %v1234_v18 = vmul.f32 -1.442695, %v1612_v16 }
  0xac   : > { %v1368_v19 = vpop.eup %1367  ;;  %v419_v20 = vadd.f32 1.0, %v1366_v17 }
  0xad   : > { %v427_v21 = vmul.f32 %v1368_v19, %v418_v14  ;;  %1369 = vpow2.f32 %v1234_v18  ;;  %vm432_vm1 = vweird.f32 %v1368_v19 }
  0xae   : > { %1371 = vrcp.f32 %v419_v20  ;;  %vm433_vm3 = vmor %vm431_vm2, %vm432_vm1  ;;  %v452_v39 = vand.u32 2147483648, %v419_v20  ;;  %v450_v42 = vand.u32 2147483647, %v419_v20  ;;  %vm446_vm6 = vweird.f32 %v419_v20 }
  0xaf   : > { %v428_v22 = vsub.f32 1.0, %v427_v21 }
  0xb0   : > { %v381_v24 = vpop.f32.mrf.mxu0  ;;  %v453_v48 = vor.u32 1.1754944e-38, %v452_v39  ;;  %vm451_vm8 = vcmp.eq.f32.partialorder %v450_v42, 8.507059e+37 }
  0xb1   : > { %v429_v25 = vmul.f32 %v1368_v19, %v428_v22  ;;  %v1616_v27 = vadd.f32 %v1607_v6, %v381_v24 }
  0xb3   : > { %v1370_v28 = vpop.eup %1369  ;;  %v430_v29 = vadd.f32 %v1368_v19, %v429_v25  ;;  %v1235_v30 = vmul.f32 -1.442695, %v1616_v27 }
  0xb4   : > { %v1372_v31 = vpop.eup %1371  ;;  %v420_v33 = vadd.f32 1.0, %v1370_v28 }
  0xb5   : > { %v434_v34 = vsel %vm433_vm3, %v1368_v19, %v430_v29  ;;  %v442_v35 = vmul.f32 %v1372_v31, %v419_v20  ;;  %1373 = vpow2.f32 %v1235_v30  ;;  %vm447_vm5 = vweird.f32 %v1372_v31 }
  0xb6   : > { %v439_v36 = vsel %vm436_vm4, %v438_v32, %v434_v34  ;;  %1375 = vrcp.f32 %v420_v33  ;;  %vm448_vm7 = vmor %vm446_vm6, %vm447_vm5  ;;  %v467_v55 = vand.u32 2147483648, %v420_v33  ;;  %v465_v58 = vand.u32 2147483647, %v420_v33 }
  0xb7   : > { %v1619_v37 = vmul.f32 %v439_v36, %v375_v8  ;;  %v443_v38 = vsub.f32 1.0, %v442_v35  ;;  %vm461_vm10 = vweird.f32 %v420_v33 }
  0xb8   : > { %v384_v40 = vpop.f32.mrf.mxu0  ;;  %v468_v0 = vor.u32 1.1754944e-38, %v467_v55  ;;  %vm466_vm12 = vcmp.eq.f32.partialorder %v465_v58, 8.507059e+37 }
  0xb9   : > { %v444_v41 = vmul.f32 %v1372_v31, %v443_v38  ;;  %v1622_v43 = vadd.f32 %v1607_v6, %v384_v40  ;;  %585 = vmax.xlane.f32.xlu0 %v1619_v37  ;;  %554 = vadd.xlane.f32.xlu1 %v1619_v37 }
  0xbb   : > { %v1374_v44 = vpop.eup %1373  ;;  %v445_v45 = vadd.f32 %v1372_v31, %v444_v41  ;;  %v1236_v46 = vmul.f32 -1.442695, %v1622_v43 }
  0xbc   : > { %v1376_v47 = vpop.eup %1375  ;;  %v421_v49 = vadd.f32 1.0, %v1374_v44 }
  0xbd   : > { %v449_v50 = vsel %vm448_vm7, %v1372_v31, %v445_v45  ;;  %v457_v51 = vmul.f32 %v1376_v47, %v420_v33  ;;  %1377 = vpow2.f32 %v1236_v46  ;;  %vm462_vm9 = vweird.f32 %v1376_v47 }
  0xbe   : > { %v454_v52 = vsel %vm451_vm8, %v453_v48, %v449_v50  ;;  %1379 = vrcp.f32 %v421_v49  ;;  %vm463_vm11 = vmor %vm461_vm10, %vm462_vm9  ;;  %v482_v8 = vand.u32 2147483648, %v421_v49  ;;  %vm476_vm14 = vweird.f32 %v421_v49 }
  0xbf   : > { %v1627_v53 = vmul.f32 %v454_v52, %v377_v11  ;;  %v458_v54 = vsub.f32 1.0, %v457_v51  ;;  %v480_v11 = vand.u32 2147483647, %v421_v49 }
  0xc0   : > { %v386_v56 = vpop.f32.mrf.mxu0  ;;  %v483_v17 = vor.u32 1.1754944e-38, %v482_v8 }
  0xc1   : > { %v459_v57 = vmul.f32 %v1376_v47, %v458_v54  ;;  %v1630_v59 = vadd.f32 %v1607_v6, %v386_v56  ;;  %556 = vadd.xlane.f32.xlu2 %v1627_v53  ;;  %vm481_vm0 = vcmp.eq.f32.partialorder %v480_v11, 8.507059e+37 }
  0xc3   : > { %v1378_v60 = vpop.eup %1377  ;;  %v460_v61 = vadd.f32 %v1376_v47, %v459_v57  ;;  %v1237_v62 = vmul.f32 -1.442695, %v1630_v59 }
  0xc4   : > { %v1380_v63 = vpop.eup %1379  ;;  %v422_v1 = vadd.f32 1.0, %v1378_v60 }
  0xc5   : > { %v464_v2 = vsel %vm463_vm11, %v1376_v47, %v460_v61  ;;  %v472_v3 = vmul.f32 %v1380_v63, %v421_v49  ;;  %1381 = vpow2.f32 %v1237_v62  ;;  %vm477_vm13 = vweird.f32 %v1380_v63 }
  0xc6   : > { %v469_v4 = vsel %vm466_vm12, %v468_v0, %v464_v2  ;;  %1383 = vrcp.f32 %v422_v1  ;;  %vm478_vm15 = vmor %vm476_vm14, %vm477_vm13  ;;  %v497_v24 = vand.u32 2147483648, %v422_v1  ;;  %v495_v28 = vand.u32 2147483647, %v422_v1 }
  0xc7   : > { %v1635_v5 = vmul.f32 %v469_v4, %v1612_v16  ;;  %v473_v7 = vsub.f32 1.0, %v472_v3  ;;  %vm491_vm2 = vweird.f32 %v422_v1 }
  0xc8   : > { %v389_v9 = vpop.f32.mrf.mxu0  ;;  %v498_v33 = vor.u32 1.1754944e-38, %v497_v24  ;;  %vm496_vm4 = vcmp.eq.f32.partialorder %v495_v28, 8.507059e+37 }
  0xc9   : > { %v474_v10 = vmul.f32 %v1380_v63, %v473_v7  ;;  %v1638_v12 = vadd.f32 %v1607_v6, %v389_v9  ;;  %587 = vmax.xlane.f32.xlu2 %v1627_v53  ;;  %558 = vadd.xlane.f32.xlu0 %v1635_v5 }
  0xca   : > { %589 = vmax.xlane.f32.xlu1 %v1635_v5 }
  0xcb   : > { %v1382_v13 = vpop.eup %1381  ;;  %v475_v14 = vadd.f32 %v1380_v63, %v474_v10  ;;  %v1238_v15 = vmul.f32 -1.442695, %v1638_v12  ;;  %v602_v10 = vld [vmem:[%s1831_s3 + $0x8] sm:$0xff] }
  0xcc   : > { %v1384_v16 = vpop.eup %1383  ;;  %v423_v18 = vadd.f32 1.0, %v1382_v13  ;;  %v603_v13 = vld [vmem:[%s1831_s3 + $0x10] sm:$0xff] }
  0xcd   : > { %v479_v19 = vsel %vm478_vm15, %v1380_v63, %v475_v14  ;;  %v487_v20 = vmul.f32 %v1384_v16, %v422_v1  ;;  %1385 = vpow2.f32 %v1238_v15  ;;  %vm492_vm1 = vweird.f32 %v1384_v16  ;;  %v605_v14 = vld [vmem:[%s1831_s3 + $0x20] sm:$0xff]  ;;  %v1688_v15 = vld [vmem:[%s1831_s3 + $0x28] sm:$0xff] }
  0xce   : > { %v484_v21 = vsel %vm481_vm0, %v483_v17, %v479_v19  ;;  %1387 = vrcp.f32 %v423_v18  ;;  %vm493_vm3 = vmor %vm491_vm2, %vm492_vm1  ;;  %v512_v40 = vand.u32 2147483648, %v423_v18  ;;  %v510_v42 = vand.u32 2147483647, %v423_v18 }
  0xcf   : > { %v1645_v22 = vmul.f32 %v484_v21, %v1616_v27  ;;  %v488_v23 = vsub.f32 1.0, %v487_v20  ;;  %vm506_vm6 = vweird.f32 %v423_v18  ;;  %v1498_v20 = vmov 128.0  }
  0xd0   : > { %v391_v25 = vpop.f32.mrf.mxu0  ;;  %v513_v47 = vor.u32 1.1754944e-38, %v512_v40  ;;  %vm511_vm8 = vcmp.eq.f32.partialorder %v510_v42, 8.507059e+37  ;;  %vm633_vm2 = vcmask 523264  }
  0xd1   : > { %v489_v26 = vmul.f32 %v1384_v16, %v488_v23  ;;  %v1648_v29 = vadd.f32 %v1607_v6, %v391_v25  ;;  %560 = vadd.xlane.f32.xlu2 %v1645_v22  ;;  %591 = vmax.xlane.f32.xlu0 %v1645_v22  ;;  %v607_v25 = vld [vmem:[%s1831_s3 + $0x30] sm:$0xff] }
  0xd3   : > { %v1386_v30 = vpop.eup %1385  ;;  %v490_v31 = vadd.f32 %v1384_v16, %v489_v26  ;;  %v1239_v32 = vmul.f32 -1.442695, %v1648_v29 }
  0xd4   : > { %v1388_v27 = vpop.eup %1387  ;;  %v424_v34 = vadd.f32 1.0, %v1386_v30 }
  0xd5   : > { %v494_v35 = vsel %vm493_vm3, %v1384_v16, %v490_v31  ;;  %v502_v36 = vmul.f32 %v1388_v27, %v423_v18  ;;  %1389 = vpow2.f32 %v1239_v32  ;;  %vm507_vm5 = vweird.f32 %v1388_v27  ;;  %v604_v16 = vld [vmem:[%s1831_s3 + $0x18] sm:$0xff] }
  0xd6   : > { %v499_v38 = vsel %vm496_vm4, %v498_v33, %v494_v35  ;;  %1391 = vrcp.f32 %v424_v34  ;;  %vm508_vm7 = vmor %vm506_vm6, %vm507_vm5  ;;  %vm521_vm9 = vweird.f32 %v424_v34  ;;  %v527_v51 = vand.u32 2147483648, %v424_v34  ;;  %v1697_v18 = vld [vmem:[%s1831_s3 + $0x38] sm:$0xff] }
  0xd7   : > { %v1654_v6 = vmul.f32 %v499_v38, %v1622_v43  ;;  %v503_v39 = vsub.f32 1.0, %v502_v36  ;;  %v525_v55 = vand.u32 2147483647, %v424_v34 }
  0xd8   : > { %v528_v57 = vor.u32 1.1754944e-38, %v527_v51 }
  0xd9   : > { %v504_v41 = vmul.f32 %v1388_v27, %v503_v39  ;;  %593 = vmax.xlane.f32.xlu2 %v1654_v6  ;;  %562 = vadd.xlane.f32.xlu1 %v1654_v6  ;;  %vm526_vm12 = vcmp.eq.f32.partialorder %v525_v55, 8.507059e+37 }
  0xdb   : > { %v1390_v44 = vpop.eup %1389  ;;  %v505_v45 = vadd.f32 %v1388_v27, %v504_v41 }
  0xdc   : > { %v1392_v46 = vpop.eup %1391  ;;  %v425_v48 = vadd.f32 1.0, %v1390_v44 }
  0xdd   : > { %v509_v49 = vsel %vm508_vm7, %v1388_v27, %v505_v45  ;;  %v517_v43 = vmul.f32 %v1392_v46, %v424_v34  ;;  %vm522_vm10 = vweird.f32 %v1392_v46 }
  0xde   : > { %v514_v50 = vsel %vm511_vm8, %v513_v47, %v509_v49  ;;  %1393 = vrcp.f32 %v425_v48  ;;  %vm523_vm11 = vmor %vm521_vm9, %vm522_vm10  ;;  %vm536_vm13 = vweird.f32 %v425_v48  ;;  %v542_v0 = vand.u32 2147483648, %v425_v48 }
  0xdf   : > { %v1659_v52 = vmul.f32 %v514_v50, %v1630_v59  ;;  %v518_v54 = vsub.f32 1.0, %v517_v43  ;;  %v540_v2 = vand.u32 2147483647, %v425_v48  ;;  %1395 = vrcp.f32 %v1498_v20 }
  0xe0   : > { %v543_v4 = vor.u32 1.1754944e-38, %v542_v0 }
  0xe1   : > { %v519_v56 = vmul.f32 %v1392_v46, %v518_v54  ;;  %595 = vmax.xlane.f32.xlu0 %v1659_v52  ;;  %564 = vadd.xlane.f32.xlu1 %v1659_v52  ;;  %vm541_vm0 = vcmp.eq.f32.partialorder %v540_v2, 8.507059e+37 }
  0xe3   : > { %v520_v58 = vadd.f32 %v1392_v46, %v519_v56 }
  0xe4   : > { %v1394_v60 = vpop.eup %1393 }
  0xe5   : > { %v524_v61 = vsel %vm523_vm11, %v1392_v46, %v520_v58  ;;  %v532_v62 = vmul.f32 %v1394_v60, %v425_v48  ;;  %vm537_vm14 = vweird.f32 %v1394_v60  ;;  %v1396_v24 = vpop.eup %1395 }
  0xe6   : > { %v529_v63 = vsel %vm526_vm12, %v528_v57, %v524_v61  ;;  %vm538_vm15 = vmor %vm536_vm13, %vm537_vm14  ;;  %v571_v26 = vmul.f32 128.0, %v1396_v24  ;;  %vm575_vm1 = vweird.f32 %v1396_v24 }
  0xe7   : > { %v1664_v59 = vmul.f32 %v529_v63, %v1638_v12  ;;  %v533_v1 = vsub.f32 1.0, %v532_v62  ;;  %v601_v12 = vld [vmem:[%s1831_s3] sm:$0xff] }
  0xe8   : > { %v572_v31 = vsub.f32 1.0, %v571_v26 }
  0xe9   : > { %v534_v3 = vmul.f32 %v1394_v60, %v533_v1  ;;  %566 = vadd.xlane.f32.xlu0 %v1664_v59  ;;  %597 = vmax.xlane.f32.xlu1 %v1664_v59  ;;  %v1499_v1 = vmov 0  }
  0xea   : > { %v573_v32 = vmul.f32 %v1396_v24, %v572_v31  ;;  %1359 = vset.pattern.permute.xlu0 %v1499_v1  ;;  %1360 = vset.pattern.permute.xlu2 %v1499_v1 }
  0xeb   : > { %v535_v7 = vadd.f32 %v1394_v60, %v534_v3  ;;  %1361 = vset.pattern.permute.xlu1 %v1499_v1 }
  0xec   : > { %v574_v34 = vadd.f32 %v1396_v24, %v573_v32 }
  0xed   : > { %v539_v8 = vsel %vm538_vm15, %v1394_v60, %v535_v7 }
  0xee   : > { %v544_v9 = vsel %vm541_vm0, %v543_v4, %v539_v8  ;;  %v576_v36 = vsel %vm575_vm1, %v1396_v24, %v574_v34 }
  0xef   : > { %v1672_v11 = vmul.f32 %v544_v9, %v1648_v29 }
  0xf1   : > { %619 = vrot.lane.b32.xlu2 %v602_v10, %s1497_s17  ;;  %568 = vadd.xlane.f32.xlu0 %v1672_v11 }
 0x102   : > { %617 = vrot.lane.b32.xlu1 %v601_v12, %s1497_s17 }
 0x105   : > { %621 = vrot.lane.b32.xlu0 %v603_v13, %s1497_s17 }
 0x10a   : > { %625 = vrot.lane.b32.xlu1 %v605_v14, %s1497_s17 }
 0x10d   : > { %627 = vrot.lane.b32.xlu0 %v1688_v15, %s1497_s17 }
 0x112   : > { %631 = vrot.lane.b32.xlu1 %v1697_v18, %s1497_s17 }
 0x11a   : > { %599 = vmax.xlane.f32.xlu2 %v1672_v11 }
 0x12c   : > { %v586_v17 = vpop.xlane.xlu0 %585  ;;  %v555_v21 = vpop.xlane.xlu1 %554 }
 0x12d   : > { %v577_v49 = vmul.f32 %v576_v36, %v555_v21 }
 0x132   : > { %623 = vrot.lane.b32.xlu2 %v604_v16, %s1497_s17 }
 0x134   : > { %v557_v30 = vpop.xlane.xlu2 %556 }
 0x135   : > { %v578_v48 = vmul.f32 %v576_v36, %v557_v30 }
 0x13a   : > { %629 = vrot.lane.b32.xlu2 %v607_v25, %s1497_s17  ;;  %s1447_s17 = sshra.s32 %s1144_s18, 4  ;;  %s1448_s17 = int_to_ptr.hbm [resolvable:$true] %s1447_s17 }
 0x13b   : > { %s1449_s20 = scalar_lea.hbm %s1448_s17, 1  ;;  %p1454_p0 = scmp.lt.s32.totalorder %s1448_s17, %s1836_s8 }
 0x13c   : > { %v559_v19 = vpop.xlane.xlu0 %558  ;;  %v588_v35 = vpop.xlane.xlu2 %587  ;;  %p1450_p11 = scmp.ne.s32.totalorder %s1448_s17, %s1449_s20  ;;  %p1455_p1 = scmp.lt.s32.totalorder %s1453_s23, %s1449_s20 }
 0x13d   : > { %v590_v28 = vpop.xlane.xlu1 %589  ;;  %v579_v47 = vmul.f32 %v576_v36, %v559_v19 }
 0x13e   : > { %p1451_p12 = pnand %p1450_p11, %p1583_p5  ;;  %p1456_p2 = por %p1455_p1, %p1454_p0 }
 0x140   : > { %p1452_p13 = pneg %p1451_p12 }
 0x142   : > { %p1457_p3 = pnand %p1456_p2, %p1452_p13 }
 0x144   : > { %v592_v23 = vpop.xlane.xlu0 %591  ;;  %v561_v44 = vpop.xlane.xlu2 %560 }
 0x145   : > { %v580_v46 = vmul.f32 %v576_v36, %v561_v44 }
 0x14c   : > { %v563_v27 = vpop.xlane.xlu1 %562  ;;  %v594_v43 = vpop.xlane.xlu2 %593 }
 0x14d   : > { %v581_v45 = vmul.f32 %v576_v36, %v563_v27 }
 0x154   : > { %v596_v29 = vpop.xlane.xlu0 %595  ;;  %v565_v40 = vpop.xlane.xlu1 %564 }
 0x155   : > { %v582_v42 = vmul.f32 %v576_v36, %v565_v40  ;;  %v620_v50 = vpop.permute.xlu2 %619 }
 0x15c   : > { %v567_v33 = vpop.xlane.xlu0 %566  ;;  %v598_v54 = vpop.xlane.xlu1 %597 }
 0x15d   : > { %v583_v41 = vmul.f32 %v576_v36, %v567_v33 }
 0x164   : > { %v569_v38 = vpop.xlane.xlu0 %568 }
 0x165   : > { %v584_v39 = vmul.f32 %v576_v36, %v569_v38 }
 0x167   : > { %715 = vmatpush.msra.mxu2 %v584_v39 }
 0x169   : > { %716 = vmatpush.msra.mxu2 %v583_v41 }
 0x16b   : > { %717 = vmatpush.msra.mxu2 %v582_v42 }
 0x16d   : > { %718 = vmatpush.msra.mxu2 %v581_v45 }
 0x16f   : > { %719 = vmatpush.msra.mxu2 %v580_v46 }
 0x171   : > { %720 = vmatpush.msra.mxu2 %v579_v47 }
 0x173   : > { %721 = vmatpush.msra.mxu2 %v578_v48 }
 0x174   : > { %v618_v55 = vpop.permute.xlu1 %617 }
 0x175   : > { %722 = vmatpush.msra.mxu2 %v577_v49 }
 0x176   : > { %1248 = vmatmul.msk.f32.vlgmr.msra.gmra.mxu2 %vm633_vm2, %v601_v12 }
 0x177   : > { %v622_v56 = vpop.permute.xlu0 %621 }
 0x17c   : > { %v626_v58 = vpop.permute.xlu1 %625 }
 0x17e   : > { %1249 = vmatmul.msk.f32.gmra.mxu2 %vm633_vm2, %v602_v10 }
 0x17f   : > { %v628_v60 = vpop.permute.xlu0 %627 }
 0x184   : > { %v632_v62 = vpop.permute.xlu1 %631 }
 0x186   : > { %1250 = vmatmul.msk.f32.gmra.mxu2 %vm633_vm2, %v603_v13 }
 0x18d   : > { %v600_v51 = vpop.xlane.xlu2 %599 }
 0x18e   : > { %658 = vmatpush.msra.mxu1 %v600_v51  ;;  %1251 = vmatmul.msk.f32.gmra.mxu2 %vm633_vm2, %v604_v16 }
 0x190   : > { %659 = vmatpush.msra.mxu1 %v598_v54 }
 0x192   : > { %660 = vmatpush.msra.mxu1 %v596_v29 }
 0x194   : > { %661 = vmatpush.msra.mxu1 %v594_v43 }
 0x195   : > { %v624_v57 = vpop.permute.xlu2 %623 }
 0x196   : > { %662 = vmatpush.msra.mxu1 %v592_v23  ;;  %1252 = vmatmul.msk.f32.gmra.mxu2 %vm633_vm2, %v605_v14 }
 0x198   : > { %663 = vmatpush.msra.mxu1 %v590_v28 }
 0x19a   : > { %664 = vmatpush.msra.mxu1 %v588_v35 }
 0x19c   : > { %665 = vmatpush.msra.mxu1 %v586_v17 }
 0x19d   : > { %1240 = vmatmul.msk.f32.vlgmr.msra.gmra.mxu1 %vm633_vm2, %v618_v55  ;;  %v630_v61 = vpop.permute.xlu2 %629 }
 0x19e   : > { %1253 = vmatmul.msk.f32.gmra.mxu2 %vm633_vm2, %v1688_v15 }
 0x1a5   : > { %1241 = vmatmul.msk.f32.gmra.mxu1 %vm633_vm2, %v620_v50 }
 0x1a6   : > { %1254 = vmatmul.msk.f32.gmra.mxu2 %vm633_vm2, %v607_v25 }
 0x1ad   : > { %1242 = vmatmul.msk.f32.gmra.mxu1 %vm633_vm2, %v622_v56 }
 0x1ae   : > { %1255 = vmatmul.msk.f32.gmra.mxu2 %vm633_vm2, %v1697_v18 }
 0x1b5   : > { %1243 = vmatmul.msk.f32.gmra.mxu1 %vm633_vm2, %v624_v57 }
 0x1bd   : > { %1244 = vmatmul.msk.f32.gmra.mxu1 %vm633_vm2, %v626_v58 }
 0x1c5   : > { %1245 = vmatmul.msk.f32.gmra.mxu1 %vm633_vm2, %v628_v60 }
 0x1cd   : > { %1246 = vmatmul.msk.f32.gmra.mxu1 %vm633_vm2, %v630_v61 }
 0x1d5   : > { %1247 = vmatmul.msk.f32.gmra.mxu1 %vm633_vm2, %v632_v62 }
 0x1f9   : > { %v724_v63 = vpop.f32.mrf.mxu2 }
 0x201   : > { %v727_v0 = vpop.f32.mrf.mxu2 }
 0x209   : > { %v730_v7 = vpop.f32.mrf.mxu2 }
 0x211   : > { %v733_v14 = vpop.f32.mrf.mxu2 }
 0x219   : > { %v736_v26 = vpop.f32.mrf.mxu2 }
 0x21a   : > { %v667_v2 = vpop.f32.mrf.mxu1 }
 0x21b   : > { %v725_v3 = vadd.f32 %v724_v63, %v667_v2 }
 0x21d   : > { %v1256_v4 = vmul.f32 -1.442695, %v725_v3 }
 0x21f   : > { %1397 = vpow2.f32 %v1256_v4 }
 0x221   : > { %v739_v47 = vpop.f32.mrf.mxu2 }
 0x222   : > { %v670_v8 = vpop.f32.mrf.mxu1 }
 0x223   : > { %v728_v9 = vadd.f32 %v727_v0, %v670_v8 }
 0x225   : > { %v1398_v10 = vpop.eup %1397  ;;  %v1257_v12 = vmul.f32 -1.442695, %v728_v9 }
 0x226   : > { %v772_v13 = vadd.f32 1.0, %v1398_v10 }
 0x227   : > { %1399 = vpow2.f32 %v1257_v12 }
 0x228   : > { %1401 = vrcp.f32 %v772_v13  ;;  %v791_v25 = vand.u32 2147483648, %v772_v13  ;;  %v789_v30 = vand.u32 2147483647, %v772_v13  ;;  %vm785_vm4 = vweird.f32 %v772_v13 }
 0x229   : > { %v742_v9 = vpop.f32.mrf.mxu2 }
 0x22a   : > { %v673_v15 = vpop.f32.mrf.mxu1  ;;  %v792_v35 = vor.u32 1.1754944e-38, %v791_v25  ;;  %vm790_vm6 = vcmp.eq.f32.partialorder %v789_v30, 8.507059e+37 }
 0x22b   : > { %v731_v16 = vadd.f32 %v730_v7, %v673_v15 }
 0x22d   : > { %v1400_v17 = vpop.eup %1399  ;;  %v1258_v18 = vmul.f32 -1.442695, %v731_v16 }
 0x22e   : > { %v1402_v19 = vpop.eup %1401  ;;  %v773_v20 = vadd.f32 1.0, %v1400_v17 }
 0x22f   : > { %1403 = vpow2.f32 %v1258_v18  ;;  %v781_v21 = vmul.f32 %v1402_v19, %v772_v13  ;;  %vm786_vm3 = vweird.f32 %v1402_v19 }
 0x230   : > { %1405 = vrcp.f32 %v773_v20  ;;  %vm787_vm5 = vmor %vm785_vm4, %vm786_vm3  ;;  %v806_v42 = vand.u32 2147483648, %v773_v20  ;;  %v804_v46 = vand.u32 2147483647, %v773_v20  ;;  %vm800_vm8 = vweird.f32 %v773_v20 }
 0x231   : > { %v782_v23 = vsub.f32 1.0, %v781_v21 }
 0x232   : > { %v676_v24 = vpop.f32.mrf.mxu1  ;;  %v807_v54 = vor.u32 1.1754944e-38, %v806_v42  ;;  %vm805_vm10 = vcmp.eq.f32.partialorder %v804_v46, 8.507059e+37 }
 0x233   : > { %v734_v28 = vadd.f32 %v733_v14, %v676_v24  ;;  %v783_v29 = vmul.f32 %v1402_v19, %v782_v23 }
 0x235   : > { %v1404_v31 = vpop.eup %1403  ;;  %v1259_v32 = vmul.f32 -1.442695, %v734_v28  ;;  %v784_v27 = vadd.f32 %v1402_v19, %v783_v29 }
 0x236   : > { %v1406_v33 = vpop.eup %1405  ;;  %v774_v34 = vadd.f32 1.0, %v1404_v31  ;;  %v745_v31 = vpop.f32.mrf.mxu2 }
 0x237   : > { %1407 = vpow2.f32 %v1259_v32  ;;  %v788_v36 = vsel %vm787_vm5, %v1402_v19, %v784_v27  ;;  %v796_v38 = vmul.f32 %v1406_v33, %v773_v20  ;;  %vm801_vm7 = vweird.f32 %v1406_v33 }
 0x238   : > { %1409 = vrcp.f32 %v774_v34  ;;  %v793_v39 = vsel %vm790_vm6, %v792_v35, %v788_v36  ;;  %vm802_vm9 = vmor %vm800_vm8, %vm801_vm7  ;;  %v821_v61 = vand.u32 2147483648, %v774_v34  ;;  %v819_v0 = vand.u32 2147483647, %v774_v34 }
 0x239   : > { %902 = vperm.xlu0 %1359, %v793_v39   ;;  %v797_v40 = vsub.f32 1.0, %v796_v38  ;;  %vm815_vm12 = vweird.f32 %v774_v34 }
 0x23a   : > { %v679_v41 = vpop.f32.mrf.mxu1  ;;  %v822_v8 = vor.u32 1.1754944e-38, %v821_v61  ;;  %vm820_vm14 = vcmp.eq.f32.partialorder %v819_v0, 8.507059e+37 }
 0x23b   : > { %v737_v44 = vadd.f32 %v736_v26, %v679_v41  ;;  %v798_v45 = vmul.f32 %v1406_v33, %v797_v40 }
 0x23d   : > { %v1408_v48 = vpop.eup %1407  ;;  %v1260_v49 = vmul.f32 -1.442695, %v737_v44  ;;  %v799_v43 = vadd.f32 %v1406_v33, %v798_v45 }
 0x23e   : > { %v1410_v50 = vpop.eup %1409  ;;  %v775_v51 = vadd.f32 1.0, %v1408_v48 }
 0x23f   : > { %1411 = vpow2.f32 %v1260_v49  ;;  %v803_v55 = vsel %vm802_vm9, %v1406_v33, %v799_v43  ;;  %v811_v56 = vmul.f32 %v1410_v50, %v774_v34  ;;  %vm816_vm11 = vweird.f32 %v1410_v50 }
 0x240   : > { %1413 = vrcp.f32 %v775_v51  ;;  %v808_v57 = vsel %vm805_vm10, %v807_v54, %v803_v55  ;;  %vm817_vm13 = vmor %vm815_vm12, %vm816_vm11  ;;  %v836_v16 = vand.u32 2147483648, %v775_v51  ;;  %v834_v19 = vand.u32 2147483647, %v775_v51 }
 0x241   : > { %907 = vperm.xlu2 %1360, %v808_v57   ;;  %v812_v58 = vsub.f32 1.0, %v811_v56  ;;  %vm830_vm0 = vweird.f32 %v775_v51 }
 0x242   : > { %v682_v60 = vpop.f32.mrf.mxu1  ;;  %v837_v26 = vor.u32 1.1754944e-38, %v836_v16  ;;  %vm835_vm3 = vcmp.eq.f32.partialorder %v834_v19, 8.507059e+37  ;;  %v1316_v19 = vld [vmem:[%s1832_s4 + $0x38] sm:$0xff] }
 0x243   : > { %v740_v62 = vadd.f32 %v739_v47, %v682_v60  ;;  %v813_v63 = vmul.f32 %v1410_v50, %v812_v58  ;;  %1028 = vmatpush.bf16.msra.mxu3 %v1316_v19 }
 0x245   : > { %v1412_v1 = vpop.eup %1411  ;;  %v1261_v2 = vmul.f32 -1.442695, %v740_v62  ;;  %v814_v3 = vadd.f32 %v1410_v50, %v813_v63 }
 0x246   : > { %v1414_v4 = vpop.eup %1413  ;;  %v776_v7 = vadd.f32 1.0, %v1412_v1 }
 0x247   : > { %1415 = vpow2.f32 %v1261_v2  ;;  %v818_v10 = vsel %vm817_vm13, %v1410_v50, %v814_v3  ;;  %v826_v12 = vmul.f32 %v1414_v4, %v775_v51  ;;  %vm831_vm15 = vweird.f32 %v1414_v4 }
 0x248   : > { %1417 = vrcp.f32 %v776_v7  ;;  %v823_v13 = vsel %vm820_vm14, %v822_v8, %v818_v10  ;;  %vm832_vm1 = vmor %vm830_vm0, %vm831_vm15  ;;  %v851_v33 = vand.u32 2147483648, %v776_v7  ;;  %v849_v36 = vand.u32 2147483647, %v776_v7 }
 0x249   : > { %912 = vperm.xlu1 %1361, %v823_v13   ;;  %v827_v14 = vsub.f32 1.0, %v826_v12  ;;  %vm845_vm5 = vweird.f32 %v776_v7 }
 0x24a   : > { %v685_v15 = vpop.f32.mrf.mxu1  ;;  %v852_v44 = vor.u32 1.1754944e-38, %v851_v33  ;;  %vm850_vm7 = vcmp.eq.f32.partialorder %v849_v36, 8.507059e+37 }
 0x24b   : > { %v743_v17 = vadd.f32 %v742_v9, %v685_v15  ;;  %v828_v18 = vmul.f32 %v1414_v4, %v827_v14 }
 0x24d   : > { %v1416_v20 = vpop.eup %1415  ;;  %v1262_v21 = vmul.f32 -1.442695, %v743_v17  ;;  %v829_v23 = vadd.f32 %v1414_v4, %v828_v18 }
 0x24e   : > { %v1418_v24 = vpop.eup %1417  ;;  %v777_v25 = vadd.f32 1.0, %v1416_v20  ;;  %v1315_v20 = vld [vmem:[%s1832_s4 + $0x30] sm:$0xff] }
 0x24f   : > { %1419 = vpow2.f32 %v1262_v21  ;;  %v833_v28 = vsel %vm832_vm1, %v1414_v4, %v829_v23  ;;  %v841_v29 = vmul.f32 %v1418_v24, %v776_v7  ;;  %vm846_vm4 = vweird.f32 %v1418_v24  ;;  %1029 = vmatpush.bf16.msra.mxu3 %v1315_v20  ;;  %v1314_v21 = vld [vmem:[%s1832_s4 + $0x28] sm:$0xff]  ;;  %v1313_v23 = vld [vmem:[%s1832_s4 + $0x20] sm:$0xff] }
 0x250   : > { %1421 = vrcp.f32 %v777_v25  ;;  %v838_v30 = vsel %vm835_vm3, %v837_v26, %v833_v28  ;;  %vm847_vm6 = vmor %vm845_vm5, %vm846_vm4  ;;  %v866_v49 = vand.u32 2147483648, %v777_v25  ;;  %v864_v50 = vand.u32 2147483647, %v777_v25  ;;  %v1310_v28 = vld [vmem:[%s1832_s4 + $0x8] sm:$0xff] }
 0x251   : > { %917 = vperm.xlu2 %1360, %v838_v30   ;;  %v842_v32 = vsub.f32 1.0, %v841_v29  ;;  %vm860_vm9 = vweird.f32 %v777_v25  ;;  %vm1103_vm5 = vcmask 1043456  }
 0x252   : > { %v688_v27 = vpop.f32.mrf.mxu1  ;;  %v867_v57 = vor.u32 1.1754944e-38, %v866_v49  ;;  %vm865_vm11 = vcmp.eq.f32.partialorder %v864_v50, 8.507059e+37 }
 0x253   : > { %v746_v34 = vadd.f32 %v745_v31, %v688_v27  ;;  %v843_v35 = vmul.f32 %v1418_v24, %v842_v32  ;;  %1030 = vmatpush.bf16.msra.mxu3 %v1314_v21  ;;  %v1309_v32 = vld [vmem:[%s1832_s4] sm:$0xff] }
 0x255   : > { %v1420_v38 = vpop.eup %1419  ;;  %v1263_v39 = vmul.f32 -1.442695, %v746_v34  ;;  %v844_v40 = vadd.f32 %v1418_v24, %v843_v35 }
 0x256   : > { %v1422_v41 = vpop.eup %1421  ;;  %v778_v42 = vadd.f32 1.0, %v1420_v38 }
 0x257   : > { %1423 = vpow2.f32 %v1263_v39  ;;  %v848_v45 = vsel %vm847_vm6, %v1418_v24, %v844_v40  ;;  %v856_v46 = vmul.f32 %v1422_v41, %v777_v25  ;;  %vm861_vm8 = vweird.f32 %v1422_v41  ;;  %1031 = vmatpush.bf16.msra.mxu3 %v1313_v23  ;;  %v1312_v24 = vld [vmem:[%s1832_s4 + $0x18] sm:$0xff]  ;;  %v1311_v25 = vld [vmem:[%s1832_s4 + $0x10] sm:$0xff]  ;;  %v1093_v23 = vld [vmem:[%s1835_s7 + $0x1] sm:$0x1] }
 0x258   : > { %1425 = vrcp.f32 %v778_v42  ;;  %v853_v47 = vsel %vm850_vm7, %v852_v44, %v848_v45  ;;  %vm862_vm10 = vmor %vm860_vm9, %vm861_vm8  ;;  %v881_v63 = vand.u32 2147483648, %v778_v42  ;;  %v879_v1 = vand.u32 2147483647, %v778_v42  ;;  %v1049_v39 = vld [vmem:[%s1834_s6 + $0x38] sm:$0xff]  ;;  %v1046_v45 = vld [vmem:[%s1834_s6 + $0x20] sm:$0xff] }
 0x259   : > { %922 = vperm.xlu1 %1361, %v853_v47   ;;  %v857_v48 = vsub.f32 1.0, %v856_v46  ;;  %vm875_vm13 = vweird.f32 %v778_v42  ;;  %vm1099_vm9 = vcmask 31744  }
 0x25a   : > { %v882_v4 = vor.u32 1.1754944e-38, %v881_v63  ;;  %vm880_vm15 = vcmp.eq.f32.partialorder %v879_v1, 8.507059e+37  ;;  %v1043_v63 = vld [vmem:[%s1834_s6 + $0x8] sm:$0xff] }
 0x25b   : > { %v858_v43 = vmul.f32 %v1422_v41, %v857_v48  ;;  %1032 = vmatpush.bf16.msra.mxu3 %v1312_v24  ;;  %v1044_v48 = vld [vmem:[%s1834_s6 + $0x10] sm:$0xff] }
 0x25d   : > { %v1424_v51 = vpop.eup %1423  ;;  %v859_v54 = vadd.f32 %v1422_v41, %v858_v43 }
 0x25e   : > { %v1426_v55 = vpop.eup %1425  ;;  %v779_v56 = vadd.f32 1.0, %v1424_v51 }
 0x25f   : > { %v863_v58 = vsel %vm862_vm10, %v1422_v41, %v859_v54  ;;  %v871_v60 = vmul.f32 %v1426_v55, %v778_v42  ;;  %vm876_vm12 = vweird.f32 %v1426_v55  ;;  %1033 = vmatpush.bf16.msra.mxu3 %v1311_v25  ;;  %vm1128_vm10 = vcmask 24576  }
 0x260   : > { %1427 = vrcp.f32 %v779_v56  ;;  %v868_v61 = vsel %vm865_vm11, %v867_v57, %v863_v58  ;;  %vm877_vm14 = vmor %vm875_vm13, %vm876_vm12  ;;  %v896_v12 = vand.u32 2147483648, %v779_v56  ;;  %v894_v14 = vand.u32 2147483647, %v779_v56 }
 0x261   : > { %927 = vperm.xlu0 %1359, %v868_v61   ;;  %v872_v62 = vsub.f32 1.0, %v871_v60  ;;  %vm890_vm1 = vweird.f32 %v779_v56 }
 0x262   : > { %v897_v16 = vor.u32 1.1754944e-38, %v896_v12  ;;  %vm895_vm4 = vcmp.eq.f32.partialorder %v894_v14, 8.507059e+37 }
 0x263   : > { %v873_v0 = vmul.f32 %v1426_v55, %v872_v62  ;;  %1034 = vmatpush.bf16.msra.mxu3 %v1310_v28 }
 0x265   : > { %v874_v2 = vadd.f32 %v1426_v55, %v873_v0 }
 0x266   : > { %v1428_v3 = vpop.eup %1427 }
 0x267   : > { %v878_v7 = vsel %vm877_vm14, %v1426_v55, %v874_v2  ;;  %v886_v8 = vmul.f32 %v1428_v3, %v779_v56  ;;  %vm891_vm0 = vweird.f32 %v1428_v3  ;;  %1035 = vmatpush.bf16.msra.mxu3 %v1309_v32 }
 0x268   : > { %v883_v9 = vsel %vm880_vm15, %v882_v4, %v878_v7  ;;  %vm892_vm3 = vmor %vm890_vm1, %vm891_vm0  ;;  %v1097_v4 = vld [vmem:[%s1835_s7 + $0x4] sm:$0xf]  ;;  %v1050_v7 = vld [vmem:[%s1835_s7] sm:$0x1] }
 0x269   : > { %932 = vperm.xlu2 %1360, %v883_v9   ;;  %v887_v10 = vsub.f32 1.0, %v886_v8 }
 0x26b   : > { %v888_v13 = vmul.f32 %v1428_v3, %v887_v10  ;;  %1062 = vmatpush.msrb.mxu3 %v1049_v39 }
 0x26d   : > { %v889_v15 = vadd.f32 %v1428_v3, %v888_v13 }
 0x26f   : > { %v893_v17 = vsel %vm892_vm3, %v1428_v3, %v889_v15 }
 0x270   : > { %v898_v18 = vsel %vm895_vm4, %v897_v16, %v893_v17 }
 0x271   : > { %937 = vperm.xlu1 %1361, %v898_v18  }
 0x29b   : > { %v908_v26 = vpop.permute.xlu2 %907 }
 0x29c   : > { %v941_v27 = vmul.f32 %v908_v26, %v1627_v53  ;;  %v1095_v26 = vld [vmem:[%s1835_s7 + $0x2] sm:$0x1] }
 0x2ab   : > { %v903_v29 = vpop.permute.xlu0 %902  ;;  %v918_v35 = vpop.permute.xlu2 %917 }
 0x2ac   : > { %v940_v31 = vmul.f32 %v903_v29, %v1619_v37  ;;  %v1048_v37 = vld [vmem:[%s1834_s6 + $0x30] sm:$0xff]  ;;  %v943_v41 = vmul.f32 %v918_v35, %v1645_v22  ;;  %v1045_v22 = vld [vmem:[%s1834_s6 + $0x18] sm:$0xff] }
 0x2ad   : > { %1063 = vmatpush.msrb.mxu3 %v1048_v37 }
 0x2ae   : > { %v948_v34 = vadd.f32 %v941_v27, %v940_v31 }
 0x2bb   : > { %v913_v30 = vpop.permute.xlu1 %912 }
 0x2bc   : > { %v942_v33 = vmul.f32 %v913_v30, %v1635_v5  ;;  %v1047_v5 = vld [vmem:[%s1834_s6 + $0x28] sm:$0xff]  ;;  %v1098_v30 = vld [vmem:[%s1835_s7 + $0x3] sm:$0x1] }
 0x2bd   : > { %1064 = vmatpush.msrb.mxu3 %v1047_v5 }
 0x2be   : > { %v949_v38 = vadd.f32 %v948_v34, %v942_v33 }
 0x2bf   : > { %1065 = vmatpush.msrb.mxu3 %v1046_v45 }
 0x2c0   : > { %v950_v42 = vadd.f32 %v949_v38, %v943_v41 }
 0x2c1   : > { %1066 = vmatpush.msrb.mxu3 %v1045_v22 }
 0x2c3   : > { %v933_v47 = vpop.permute.xlu2 %932  ;;  %1067 = vmatpush.msrb.mxu3 %v1044_v48 }
 0x2c5   : > { %1068 = vmatpush.msrb.mxu3 %v1043_v63 }
 0x2cb   : > { %v923_v36 = vpop.permute.xlu1 %922 }
 0x2cc   : > { %v944_v53 = vmul.f32 %v923_v36, %v1654_v6 }
 0x2ce   : > { %v951_v46 = vadd.f32 %v950_v42, %v944_v53 }
 0x2d3   : > { %v928_v40 = vpop.permute.xlu0 %927 }
 0x2d4   : > { %v945_v44 = vmul.f32 %v928_v40, %v1659_v52  ;;  %v946_v52 = vmul.f32 %v933_v47, %v1664_v59  ;;  %v1042_v59 = vld [vmem:[%s1834_s6] sm:$0xff] }
 0x2d5   : > { %1069 = vmatpush.msrb.mxu3 %v1042_v59 }
 0x2d6   : > { %v952_v6 = vadd.f32 %v951_v46, %v945_v44 }
 0x2d8   : > { %v953_v43 = vadd.f32 %v952_v6, %v946_v52 }
 0x2e3   : > { %v938_v49 = vpop.permute.xlu1 %937 }
 0x2e4   : > { %v947_v50 = vmul.f32 %v938_v49, %v1672_v11  ;;  %v979_v11 = vld [vmem:[%s1833_s5] sm:$0x1] }
 0x2e6   : > { %v954_v51 = vadd.f32 %v953_v43, %v947_v50 }
 0x2e8   : > { %v955_v54 = vrot.slane %v954_v51, 4 }
 0x2ea   : > { %v956_v55 = vadd.f32 %v955_v54, %v954_v51 }
 0x2ec   : > { %v957_v56 = vrot.slane %v956_v55, 2 }
 0x2ee   : > { %v958_v57 = vadd.f32 %v957_v56, %v956_v55 }
 0x2f0   : > { %v959_v58 = vrot.slane %v958_v57, 1 }
 0x2f2   : > { %v960_v60 = vadd.f32 %v959_v58, %v958_v57 }
 0x2f4   : > { %v961_v61 = vmul.f32 0.015625, %v960_v60 }
 0x2f6   : > { %v962_v62 = vpack.c.bf16 %v961_v61, %v961_v61 }
 0x2f8   : > { %1036 = vmatmul.bf16.vlgmr.msra.gmra.mxu3 %v962_v62 }
 0x2f9   : > { %1298 = vmatpush.msk.msra.mxu3 %vm1103_vm5, %v1097_v4 }
 0x37b   : > { %v1037_v0 = vpop.f32.mrf.mxu3 }
 0x37c   : > { %v1038_v1 = vadd.f32 %v1037_v0, %v979_v11 }
 0x37e   : > { %v1041_v2 = vmax.f32 %v1038_v1, 0.0 }
 0x380   : > { %1296 = vmatmul.msk.f32.vlgmr.msrb.gmra.mxu3 %vm633_vm2, %v1041_v2 }
 0x383   : > { %v1039_v3 = vpop.f32.mrf.mxu3 }
 0x403   : > { %v1071_v8 = vpop.f32.mrf.mxu3 }
 0x404   : > { %v1072_v9 = vadd.f32 %v1071_v8, %v1050_v7 }
 0x406   : > { %v1297_v10 = vmul.f32 -1.442695, %v1072_v9 }
 0x408   : > { %1429 = vpow2.f32 %v1297_v10 }
 0x40e   : > { %v1430_v12 = vpop.eup %1429 }
 0x40f   : > { %v1077_v13 = vadd.f32 1.0, %v1430_v12 }
 0x411   : > { %1431 = vrcp.f32 %v1077_v13  ;;  %v1089_v17 = vand.u32 2147483648, %v1077_v13  ;;  %v1087_v19 = vand.u32 2147483647, %v1077_v13  ;;  %vm1083_vm6 = vweird.f32 %v1077_v13 }
 0x413   : > { %v1090_v21 = vor.u32 1.1754944e-38, %v1089_v17  ;;  %vm1088_vm8 = vcmp.eq.f32.partialorder %v1087_v19, 8.507059e+37 }
 0x417   : > { %v1432_v14 = vpop.eup %1431 }
 0x418   : > { %v1079_v15 = vmul.f32 %v1432_v14, %v1077_v13  ;;  %vm1084_vm2 = vweird.f32 %v1432_v14 }
 0x419   : > { %vm1085_vm7 = vmor %vm1083_vm6, %vm1084_vm2 }
 0x41a   : > { %v1080_v16 = vsub.f32 1.0, %v1079_v15 }
 0x41c   : > { %v1081_v18 = vmul.f32 %v1432_v14, %v1080_v16 }
 0x41e   : > { %v1082_v20 = vadd.f32 %v1432_v14, %v1081_v18 }
 0x420   : > { %v1086_v24 = vsel %vm1085_vm7, %v1432_v14, %v1082_v20 }
 0x421   : > { %v1091_v25 = vsel %vm1088_vm8, %v1090_v21, %v1086_v24 }
 0x422   : > { %v1094_v28 = vmul.f32 %v1093_v23, %v1091_v25 }
 0x424   : > { %v1096_v29 = vadd.f32 %v1095_v26, %v1094_v28 }
 0x426   : > { %1299 = vmatmul.msk.f32.vlgmr.msra.gmra.mxu3 %vm1099_vm9, %v1096_v29 }
 0x4a9   : > { %v1124_v31 = vpop.f32.mrf.mxu3 }
 0x4aa   : > { %v1125_v32 = vadd.f32 %v1124_v31, %v1098_v30 }
 0x4ac   : > { %v1127_v27 = vmax.f32 %v1096_v29, %v1125_v32 }
 0x4ae   : > { %1129 = vst.msk [vmem:[%s297_s12] sm:$0x1] %vm1128_vm10, %v1127_v27 }
 0x4af   : > { %1460 = shalt.err (!%p1457_p3)
}
 0x4b0   : > { %1317 = dma.vmem_to_hbm [thread:$0]  (%p1583_p5), %s1142_s13, 16, %s1144_s18, %s1131_s19  }
 0x4b1 PF: > { %p1323_p4 = scmp.ge.s32.totalorder %s1495_s30, 2  ;;  %s1155_s22 = sand.u32 1, %s1483_s27  }
 0x4b2   : > { %s1156_s26 = scalar_lea.sflag [#allocation3], %s1155_s22 }
 0x4b3   : > { %p1320_p7 = pnand %p1323_p4, %p1587_p6 }
 0x4b5   : > { %p1321_p8 = pneg %p1320_p7 }
 0x4b7   : > { %1478 = dma.done.wait (%p1321_p8), %s1156_s26, 16  }
 0x4b8   : > { %1480 = vsyncadd (%p1321_p8), %s1156_s26, 4294967280  ;;  %p18_p9 = scmp.ge.s32.totalorder %s1570_s11, 4   ;;  %s1839_s27 = smov %s1487_s28 }
 0x4b9   : > { %s1840_s28 = smov %s1491_s29  ;;  %s1841_s29 = smov %s1581_s14 }
 0x4ba   : > { %s1842_s30 = smov %s1570_s11  ;;  %20 = sbr.rel (!%p18_p9) target bundleno = 3 (0x3), region = 87 }
 0x4bf   :  { %1161 = vsyncpa [#allocation3], 1 }
 0x4c0   :  { %1163 = vsyncpa [#allocation3 + $0x1], 1 }

</bundles_post_ra>
